<compile_context>
chip_gen: v7x
topology: tpu7x:2x2x1
jax: 0.10.0
libtpu: 0.0.40
codegen_flags: <defaults>
</compile_context>

<pallas_src>
import math
import functools

import jax
import jax.numpy as jnp
import numpy as np
from jax import lax
from jax.experimental import pallas as pl
from jax.experimental.pallas import tpu as pltpu

# ---- model config (small, consistent with module's __init__) ----
D_MODEL = 32
NHEAD = 4
HEAD_DIM = D_MODEL // NHEAD
DIM_FF = 64
SEQ = 8
BATCH = 2
LN_EPS = 1e-5

# packed slab geometry (lane-/sublane-aligned)
W_ROWS = D_MODEL + DIM_FF          # 96  (multiple of 8)
W_COLS = 256                       # >= 4*D + FF = 192, multiple of 128
V_ROWS = 8
V_COLS = 128                       # == 2*D + FF


def _layer_norm(x, gamma, beta):
    # x: (N, D), gamma/beta: (1, D); biased variance (torch LayerNorm semantics).
    mu = jnp.mean(x, axis=-1, keepdims=True)
    var = jnp.mean((x - mu) ** 2, axis=-1, keepdims=True)
    return (x - mu) * lax.rsqrt(var + LN_EPS) * gamma + beta


def encoder_layer_kernel(x_ref, pos_ref, w_ref, vec_ref, o_ref, sc_ref,
                         *, batch, nhead, dim_ff):
    x = x_ref[...]        # (SB, D)  rows interleave batches: row i -> (seq i//B, batch i%B)
    pos = pos_ref[...]    # (SB, D)
    SB, D = x.shape
    hd = D // nhead
    FF = dim_ff

    # ---- unpack weight slab (static ref slices: no runtime cost) ----
    wqk = w_ref[0:D, 0:2 * D]                     # (D, 2D)  Q half pre-scaled
    w1 = w_ref[0:D, 2 * D:2 * D + FF]             # (D, FF)
    wv = w_ref[0:D, 2 * D + FF:3 * D + FF]        # (D, D)
    wo = w_ref[0:D, 3 * D + FF:4 * D + FF]        # (D, D)
    w2 = w_ref[D:D + FF, 0:D]                     # (FF, D)

    # ---- unpack vector slab ----
    bqk = vec_ref[0:1, 0:2 * D]                   # (1, 2D)  Q half pre-scaled
    b1 = vec_ref[0:1, 2 * D:2 * D + FF]           # (1, FF)
    bv = vec_ref[1:2, 0:D]
    bo = vec_ref[2:3, 0:D]
    g1 = vec_ref[3:4, 0:D]
    be1 = vec_ref[4:5, 0:D]
    b2 = vec_ref[5:6, 0:D]
    g2 = vec_ref[6:7, 0:D]
    be2 = vec_ref[7:8, 0:D]

    # q = k = src + pos ; value = src   (single fused Wq|Wk matmul, scale folded in)
    qk = jnp.dot(x + pos, wqk, preferred_element_type=jnp.float32) + bqk
    q = qk[:, :D]
    k = qk[:, D:]
    v = jnp.dot(x, wv, preferred_element_type=jnp.float32) + bv

    # additive block-diagonal (same-batch) mask, computed once
    row = lax.broadcasted_iota(jnp.int32, (SB, SB), 0)
    col = lax.broadcasted_iota(jnp.int32, (SB, SB), 1)
    if batch & (batch - 1) == 0:
        same = (row & (batch - 1)) == (col & (batch - 1))
    else:
        same = (row % batch) == (col % batch)
    neg = jnp.where(same, 0.0, -1e30).astype(jnp.float32)

    # all-head scores stacked into one (nhead*SB, SB) scratch (8-aligned sublane
    # offsets) so mask / max / exp / sum / reciprocal are issued a single time.
    for h in range(nhead):
        sl = slice(h * hd, (h + 1) * hd)
        s = lax.dot_general(q[:, sl], k[:, sl],
                            dimension_numbers=(((1,), (1,)), ((), ())),
                            preferred_element_type=jnp.float32)   # (SB, SB)
        sc_ref[h * SB:(h + 1) * SB, :] = s + neg

    scores = sc_ref[...]                                          # (nhead*SB, SB)
    scores = scores - jnp.max(scores, axis=-1, keepdims=True)
    probs = jnp.exp(scores)
    denom = jnp.sum(probs, axis=-1, keepdims=True)
    r = pl.reciprocal(denom, approx=True)
    r = r * (2.0 - denom * r)            # one Newton step -> ~1e-7 rel error
    probs = probs * r

    # PV + output projection folded into the head loop (sum over heads, no concat)
    attn = jnp.zeros((SB, D), jnp.float32)
    for h in range(nhead):
        sl = slice(h * hd, (h + 1) * hd)
        ph = probs[h * SB:(h + 1) * SB, :]                        # (SB, SB)
        oh = jnp.dot(ph, v[:, sl], preferred_element_type=jnp.float32)      # (SB, hd)
        attn = attn + jnp.dot(oh, wo[sl, :], preferred_element_type=jnp.float32)
    attn = attn + bo

    # residual + norm1   (dropout1 is identity in eval)
    y = _layer_norm(x + attn, g1, be1)

    # FFN: linear1 -> relu -> linear2   (dropout is identity in eval)
    h1 = jnp.maximum(
        jnp.dot(y, w1, preferred_element_type=jnp.float32) + b1, 0.0)
    h2 = jnp.dot(h1, w2, preferred_element_type=jnp.float32) + b2

    # residual + norm2   (dropout2 is identity in eval)
    o_ref[...] = _layer_norm(y + h2, g2, be2)


def transformer_encoder_layer(src, pos, packed):
    """src, pos: (S, B, D) float32 (seq-first, PyTorch MHA convention)."""
    S, B, D = src.shape
    SB = S * B
    # Contiguous reshape (free / no-copy) instead of wrapper transposes.
    x2d = src.astype(jnp.float32).reshape(SB, D)
    p2d = pos.astype(jnp.float32).reshape(SB, D)

    kernel = functools.partial(encoder_layer_kernel,
                               batch=B, nhead=NHEAD, dim_ff=DIM_FF)

    # No grid: the whole working set (<110 KiB) is DMA'd into VMEM once.
    out2d = pl.pallas_call(
        kernel,
        out_shape=jax.ShapeDtypeStruct((SB, D), jnp.float32),
        scratch_shapes=[pltpu.VMEM((NHEAD * SB, SB), jnp.float32)],
    )(x2d, p2d, packed["w"], packed["vecs"])

    return out2d.reshape(S, B, D)   # free contiguous reshape back to (S, B, D)


# ---------------- pure-JAX reference (same math, unpacked params) ----------------
def reference_layer(src, pos, params):
    x = src.astype(jnp.float32)
    p = pos.astype(jnp.float32)
    qk = x + p
    q = qk @ params["wq"] + params["bq"]
    k = qk @ params["wk"] + params["bk"]
    v = x @ params["wv"] + params["bv"]

    S, B, D = x.shape

    def split_heads(t):  # (S, B, D) -> (B, H, S, hd)
        return jnp.transpose(t.reshape(S, B, NHEAD, HEAD_DIM), (1, 2, 0, 3))

    qh, kh, vh = split_heads(q), split_heads(k), split_heads(v)
    s = jnp.einsum("bhqd,bhkd->bhqk", qh * (1.0 / math.sqrt(HEAD_DIM)), kh)
    a = jax.nn.softmax(s, axis=-1)
    o = jnp.einsum("bhqk,bhkd->bhqd", a, vh)            # (B, H, S, hd)
    o = jnp.transpose(o, (2, 0, 1, 3)).reshape(S, B, D)
    attn = o @ params["wo"] + params["bo"]

    def ln(t, g, b):
        mu = jnp.mean(t, axis=-1, keepdims=True)
        var = jnp.mean((t - mu) ** 2, axis=-1, keepdims=True)
        return (t - mu) / jnp.sqrt(var + LN_EPS) * g + b

    y = ln(x + attn, params["g1"], params["be1"])
    h = jnp.maximum(y @ params["w1"] + params["b1"], 0.0) @ params["w2"] + params["b2"]
    return ln(y + h, params["g2"], params["be2"])


def make_params(key):
    ks = jax.random.split(key, 12)
    sc = 0.1
    # stored pre-transposed as (D_in, D_out) so the kernel does x @ W
    params = {
        "wq": jax.random.normal(ks[0], (D_MODEL, D_MODEL), jnp.float32) * sc,
        "wk": jax.random.normal(ks[1], (D_MODEL, D_MODEL), jnp.float32) * sc,
        "wv": jax.random.normal(ks[2], (D_MODEL, D_MODEL), jnp.float32) * sc,
        "bq": jax.random.normal(ks[3], (1, D_MODEL), jnp.float32) * sc,
        "bk": jax.random.normal(ks[4], (1, D_MODEL), jnp.float32) * sc,
        "bv": jax.random.normal(ks[5], (1, D_MODEL), jnp.float32) * sc,
        "wo": jax.random.normal(ks[6], (D_MODEL, D_MODEL), jnp.float32) * sc,
        "bo": jax.random.normal(ks[7], (1, D_MODEL), jnp.float32) * sc,
        "g1": jnp.ones((1, D_MODEL), jnp.float32),
        "be1": jnp.zeros((1, D_MODEL), jnp.float32),
        "w1": jax.random.normal(ks[8], (D_MODEL, DIM_FF), jnp.float32) * sc,
        "b1": jax.random.normal(ks[9], (1, DIM_FF), jnp.float32) * sc,
        "w2": jax.random.normal(ks[10], (DIM_FF, D_MODEL), jnp.float32) * sc,
        "b2": jax.random.normal(ks[11], (1, D_MODEL), jnp.float32) * sc,
        "g2": jnp.ones((1, D_MODEL), jnp.float32),
        "be2": jnp.zeros((1, D_MODEL), jnp.float32),
    }
    return params


def pack_params(p):
    """One-time packing (outside the hot path) into two aligned VMEM slabs.

    weight slab (96, 256):
      rows 0:D   cols 0:2D        -> Wq(*1/sqrt(hd)) | Wk
      rows 0:D   cols 2D:2D+FF    -> W1
      rows 0:D   cols 2D+FF:3D+FF -> Wv
      rows 0:D   cols 3D+FF:4D+FF -> Wo
      rows D:D+FF cols 0:D        -> W2
    vector slab (8, 128):
      row 0: bq(*1/sqrt(hd)) | bk | b1 ; rows 1..7: bv, bo, g1, be1, b2, g2, be2
    """
    D, FF = D_MODEL, DIM_FF
    scale = 1.0 / math.sqrt(HEAD_DIM)

    w = jnp.zeros((W_ROWS, W_COLS), jnp.float32)
    w = w.at[0:D, 0:D].set(p["wq"] * scale)
    w = w.at[0:D, D:2 * D].set(p["wk"])
    w = w.at[0:D, 2 * D:2 * D + FF].set(p["w1"])
    w = w.at[0:D, 2 * D + FF:3 * D + FF].set(p["wv"])
    w = w.at[0:D, 3 * D + FF:4 * D + FF].set(p["wo"])
    w = w.at[D:D + FF, 0:D].set(p["w2"])

    v = jnp.zeros((V_ROWS, V_COLS), jnp.float32)
    v = v.at[0:1, 0:D].set(p["bq"] * scale)
    v = v.at[0:1, D:2 * D].set(p["bk"])
    v = v.at[0:1, 2 * D:2 * D + FF].set(p["b1"])
    v = v.at[1:2, 0:D].set(p["bv"])
    v = v.at[2:3, 0:D].set(p["bo"])
    v = v.at[3:4, 0:D].set(p["g1"])
    v = v.at[4:5, 0:D].set(p["be1"])
    v = v.at[5:6, 0:D].set(p["b2"])
    v = v.at[6:7, 0:D].set(p["g2"])
    v = v.at[7:8, 0:D].set(p["be2"])

    return {"w": w, "vecs": v}


if __name__ == "__main__":
    key = jax.random.PRNGKey(0)
    k_src, k_pos, k_par = jax.random.split(key, 3)
    src = jax.random.normal(k_src, (SEQ, BATCH, D_MODEL), jnp.float32)
    pos = jax.random.normal(k_pos, (SEQ, BATCH, D_MODEL), jnp.float32)
    params = make_params(k_par)
    packed = pack_params(params)

    out = transformer_encoder_layer(src, pos, packed)
    out = jax.block_until_ready(out)

    ref = jax.block_until_ready(reference_layer(src, pos, params))
    np.testing.assert_allclose(np.asarray(out), np.asarray(ref), rtol=1e-4, atol=1e-4)

    print("KERNEL_OK")
</pallas_src>

<mosaic_0001>
module attributes {stable_mosaic.version = 11 : i64} {
  func.func @encoder_layer_kernel(%arg0: memref<16x32xf32, #tpu.memory_space<vmem>>, %arg1: memref<16x32xf32, #tpu.memory_space<vmem>>, %arg2: memref<96x256xf32, #tpu.memory_space<vmem>>, %arg3: memref<8x128xf32, #tpu.memory_space<vmem>>, %arg4: memref<16x32xf32, #tpu.memory_space<vmem>>, %arg5: memref<64x16xf32, #tpu.memory_space<vmem>>) attributes {dimension_semantics = [], scalar_prefetch = 0 : i64, scratch_operands = 1 : i64, tpu.core_type = #tpu.core_type<tc>} {
    %c0 = arith.constant 0 : index
    %c0_0 = arith.constant 0 : index
    %0 = vector.load %arg0[%c0, %c0_0] : memref<16x32xf32, #tpu.memory_space<vmem>>, vector<16x32xf32>
    %c0_1 = arith.constant 0 : index
    %c0_2 = arith.constant 0 : index
    %1 = vector.load %arg1[%c0_1, %c0_2] : memref<16x32xf32, #tpu.memory_space<vmem>>, vector<16x32xf32>
    %c0_3 = arith.constant 0 : index
    %c0_4 = arith.constant 0 : index
    %2 = vector.load %arg2[%c0_3, %c0_4] : memref<96x256xf32, #tpu.memory_space<vmem>>, vector<32x64xf32>
    %c0_5 = arith.constant 0 : index
    %c64 = arith.constant 64 : index
    %3 = vector.load %arg2[%c0_5, %c64] : memref<96x256xf32, #tpu.memory_space<vmem>>, vector<32x64xf32>
    %c0_6 = arith.constant 0 : index
    %c128 = arith.constant 128 : index
    %4 = vector.load %arg2[%c0_6, %c128] : memref<96x256xf32, #tpu.memory_space<vmem>>, vector<32x32xf32>
    %c0_7 = arith.constant 0 : index
    %c160 = arith.constant 160 : index
    %5 = vector.load %arg2[%c0_7, %c160] : memref<96x256xf32, #tpu.memory_space<vmem>>, vector<32x32xf32>
    %c32 = arith.constant 32 : index
    %c0_8 = arith.constant 0 : index
    %6 = vector.load %arg2[%c32, %c0_8] : memref<96x256xf32, #tpu.memory_space<vmem>>, vector<64x32xf32>
    %c0_9 = arith.constant 0 : index
    %c0_10 = arith.constant 0 : index
    %7 = vector.load %arg3[%c0_9, %c0_10] : memref<8x128xf32, #tpu.memory_space<vmem>>, vector<1x64xf32>
    %c0_11 = arith.constant 0 : index
    %c64_12 = arith.constant 64 : index
    %8 = vector.load %arg3[%c0_11, %c64_12] : memref<8x128xf32, #tpu.memory_space<vmem>>, vector<1x64xf32>
    %c1 = arith.constant 1 : index
    %c0_13 = arith.constant 0 : index
    %9 = vector.load %arg3[%c1, %c0_13] : memref<8x128xf32, #tpu.memory_space<vmem>>, vector<1x32xf32>
    %c2 = arith.constant 2 : index
    %c0_14 = arith.constant 0 : index
    %10 = vector.load %arg3[%c2, %c0_14] : memref<8x128xf32, #tpu.memory_space<vmem>>, vector<1x32xf32>
    %c3 = arith.constant 3 : index
    %c0_15 = arith.constant 0 : index
    %11 = vector.load %arg3[%c3, %c0_15] : memref<8x128xf32, #tpu.memory_space<vmem>>, vector<1x32xf32>
    %c4 = arith.constant 4 : index
    %c0_16 = arith.constant 0 : index
    %12 = vector.load %arg3[%c4, %c0_16] : memref<8x128xf32, #tpu.memory_space<vmem>>, vector<1x32xf32>
    %c5 = arith.constant 5 : index
    %c0_17 = arith.constant 0 : index
    %13 = vector.load %arg3[%c5, %c0_17] : memref<8x128xf32, #tpu.memory_space<vmem>>, vector<1x32xf32>
    %c6 = arith.constant 6 : index
    %c0_18 = arith.constant 0 : index
    %14 = vector.load %arg3[%c6, %c0_18] : memref<8x128xf32, #tpu.memory_space<vmem>>, vector<1x32xf32>
    %c7 = arith.constant 7 : index
    %c0_19 = arith.constant 0 : index
    %15 = vector.load %arg3[%c7, %c0_19] : memref<8x128xf32, #tpu.memory_space<vmem>>, vector<1x32xf32>
    %16 = arith.addf %0, %1 : vector<16x32xf32>
    %cst = arith.constant dense<0.000000e+00> : vector<16x64xf32>
    %17 = tpu.matmul %16, %2, %cst {dimension_numbers = #tpu.dot_dimension_numbers<[1], [0], [0], [1], [0, 0, 1, 1], [], []>} : vector<16x32xf32>, vector<32x64xf32>, vector<16x64xf32> -> vector<16x64xf32>
    %18 = vector.broadcast %7 : vector<1x64xf32> to vector<16x64xf32>
    %19 = arith.addf %17, %18 : vector<16x64xf32>
    %20 = vector.extract_strided_slice %19 {offsets = [0, 0], sizes = [16, 32], strides = [1, 1]} : vector<16x64xf32> to vector<16x32xf32>
    %21 = vector.extract_strided_slice %19 {offsets = [0, 32], sizes = [16, 32], strides = [1, 1]} : vector<16x64xf32> to vector<16x32xf32>
    %cst_20 = arith.constant dense<0.000000e+00> : vector<16x32xf32>
    %22 = tpu.matmul %0, %4, %cst_20 {dimension_numbers = #tpu.dot_dimension_numbers<[1], [0], [0], [1], [0, 0, 1, 1], [], []>} : vector<16x32xf32>, vector<32x32xf32>, vector<16x32xf32> -> vector<16x32xf32>
    %23 = vector.broadcast %9 : vector<1x32xf32> to vector<16x32xf32>
    %24 = arith.addf %22, %23 : vector<16x32xf32>
    %25 = tpu.iota {dimensions = array<i32: 0>} : vector<16x16xi32>
    %26 = tpu.iota {dimensions = array<i32: 1>} : vector<16x16xi32>
    %c1_i32 = arith.constant 1 : i32
    %27 = vector.broadcast %c1_i32 : i32 to vector<16x16xi32>
    %28 = arith.andi %25, %27 : vector<16x16xi32>
    %c1_i32_21 = arith.constant 1 : i32
    %29 = vector.broadcast %c1_i32_21 : i32 to vector<16x16xi32>
    %30 = arith.andi %26, %29 : vector<16x16xi32>
    %31 = arith.cmpi eq, %28, %30 : vector<16x16xi32>
    %cst_22 = arith.constant 0.000000e+00 : f32
    %cst_23 = arith.constant -1.000000e+30 : f32
    %32 = vector.broadcast %cst_22 : f32 to vector<16x16xf32>
    %33 = vector.broadcast %cst_23 : f32 to vector<16x16xf32>
    %34 = arith.select %31, %32, %33 : vector<16x16xi1>, vector<16x16xf32>
    %35 = vector.extract_strided_slice %20 {offsets = [0, 0], sizes = [16, 8], strides = [1, 1]} : vector<16x32xf32> to vector<16x8xf32>
    %36 = vector.extract_strided_slice %21 {offsets = [0, 0], sizes = [16, 8], strides = [1, 1]} : vector<16x32xf32> to vector<16x8xf32>
    %cst_24 = arith.constant dense<0.000000e+00> : vector<16x16xf32>
    %37 = tpu.matmul %35, %36, %cst_24 {dimension_numbers = #tpu.dot_dimension_numbers<[1], [1], [0], [0], [0, 0, 1, 0], [], []>} : vector<16x8xf32>, vector<16x8xf32>, vector<16x16xf32> -> vector<16x16xf32>
    %38 = arith.addf %37, %34 : vector<16x16xf32>
    %c0_25 = arith.constant 0 : index
    %c0_26 = arith.constant 0 : index
    %39 = vector.load %arg5[%c0_25, %c0_26] : memref<64x16xf32, #tpu.memory_space<vmem>>, vector<16x16xf32>
    tpu.vector_store %arg5[%c0_25, %c0_26], %38 {strides = array<i32>} : memref<64x16xf32, #tpu.memory_space<vmem>>, vector<16x16xf32>,
    %40 = vector.extract_strided_slice %20 {offsets = [0, 8], sizes = [16, 8], strides = [1, 1]} : vector<16x32xf32> to vector<16x8xf32>
    %41 = vector.extract_strided_slice %21 {offsets = [0, 8], sizes = [16, 8], strides = [1, 1]} : vector<16x32xf32> to vector<16x8xf32>
    %cst_27 = arith.constant dense<0.000000e+00> : vector<16x16xf32>
    %42 = tpu.matmul %40, %41, %cst_27 {dimension_numbers = #tpu.dot_dimension_numbers<[1], [1], [0], [0], [0, 0, 1, 0], [], []>} : vector<16x8xf32>, vector<16x8xf32>, vector<16x16xf32> -> vector<16x16xf32>
    %43 = arith.addf %42, %34 : vector<16x16xf32>
    %c16 = arith.constant 16 : index
    %c0_28 = arith.constant 0 : index
    %44 = vector.load %arg5[%c16, %c0_28] : memref<64x16xf32, #tpu.memory_space<vmem>>, vector<16x16xf32>
    tpu.vector_store %arg5[%c16, %c0_28], %43 {strides = array<i32>} : memref<64x16xf32, #tpu.memory_space<vmem>>, vector<16x16xf32>,
    %45 = vector.extract_strided_slice %20 {offsets = [0, 16], sizes = [16, 8], strides = [1, 1]} : vector<16x32xf32> to vector<16x8xf32>
    %46 = vector.extract_strided_slice %21 {offsets = [0, 16], sizes = [16, 8], strides = [1, 1]} : vector<16x32xf32> to vector<16x8xf32>
    %cst_29 = arith.constant dense<0.000000e+00> : vector<16x16xf32>
    %47 = tpu.matmul %45, %46, %cst_29 {dimension_numbers = #tpu.dot_dimension_numbers<[1], [1], [0], [0], [0, 0, 1, 0], [], []>} : vector<16x8xf32>, vector<16x8xf32>, vector<16x16xf32> -> vector<16x16xf32>
    %48 = arith.addf %47, %34 : vector<16x16xf32>
    %c32_30 = arith.constant 32 : index
    %c0_31 = arith.constant 0 : index
    %49 = vector.load %arg5[%c32_30, %c0_31] : memref<64x16xf32, #tpu.memory_space<vmem>>, vector<16x16xf32>
    tpu.vector_store %arg5[%c32_30, %c0_31], %48 {strides = array<i32>} : memref<64x16xf32, #tpu.memory_space<vmem>>, vector<16x16xf32>,
    %50 = vector.extract_strided_slice %20 {offsets = [0, 24], sizes = [16, 8], strides = [1, 1]} : vector<16x32xf32> to vector<16x8xf32>
    %51 = vector.extract_strided_slice %21 {offsets = [0, 24], sizes = [16, 8], strides = [1, 1]} : vector<16x32xf32> to vector<16x8xf32>
    %cst_32 = arith.constant dense<0.000000e+00> : vector<16x16xf32>
    %52 = tpu.matmul %50, %51, %cst_32 {dimension_numbers = #tpu.dot_dimension_numbers<[1], [1], [0], [0], [0, 0, 1, 0], [], []>} : vector<16x8xf32>, vector<16x8xf32>, vector<16x16xf32> -> vector<16x16xf32>
    %53 = arith.addf %52, %34 : vector<16x16xf32>
    %c48 = arith.constant 48 : index
    %c0_33 = arith.constant 0 : index
    %54 = vector.load %arg5[%c48, %c0_33] : memref<64x16xf32, #tpu.memory_space<vmem>>, vector<16x16xf32>
    tpu.vector_store %arg5[%c48, %c0_33], %53 {strides = array<i32>} : memref<64x16xf32, #tpu.memory_space<vmem>>, vector<16x16xf32>,
    %c0_34 = arith.constant 0 : index
    %c0_35 = arith.constant 0 : index
    %55 = vector.load %arg5[%c0_34, %c0_35] : memref<64x16xf32, #tpu.memory_space<vmem>>, vector<64x16xf32>
    %cst_36 = arith.constant dense<0xFF800000> : vector<64xf32>
    %56 = vector.multi_reduction <maximumf>, %55, %cst_36 [1] : vector<64x16xf32> to vector<64xf32>
    %57 = vector.shape_cast %56 : vector<64xf32> to vector<64x1xf32>
    %58 = vector.broadcast %57 : vector<64x1xf32> to vector<64x16xf32>
    %59 = arith.subf %55, %58 : vector<64x16xf32>
    %60 = math.exp %59 : vector<64x16xf32>
    %cst_37 = arith.constant dense<0.000000e+00> : vector<64xf32>
    %61 = vector.multi_reduction <add>, %60, %cst_37 [1] : vector<64x16xf32> to vector<64xf32>
    %62 = vector.shape_cast %61 : vector<64xf32> to vector<64x1xf32>
    %63 = tpu.reciprocal %62 {approx = true} : vector<64x1xf32> -> vector<64x1xf32>
    %64 = arith.mulf %62, %63 : vector<64x1xf32>
    %cst_38 = arith.constant 2.000000e+00 : f32
    %65 = vector.broadcast %cst_38 : f32 to vector<64x1xf32>
    %66 = arith.subf %65, %64 : vector<64x1xf32>
    %67 = arith.mulf %63, %66 : vector<64x1xf32>
    %68 = vector.broadcast %67 : vector<64x1xf32> to vector<64x16xf32>
    %69 = arith.mulf %60, %68 : vector<64x16xf32>
    %cst_39 = arith.constant 0.000000e+00 : f32
    %70 = vector.broadcast %cst_39 : f32 to vector<16x32xf32>
    %71 = vector.extract_strided_slice %69 {offsets = [0, 0], sizes = [16, 16], strides = [1, 1]} : vector<64x16xf32> to vector<16x16xf32>
    %72 = vector.extract_strided_slice %24 {offsets = [0, 0], sizes = [16, 8], strides = [1, 1]} : vector<16x32xf32> to vector<16x8xf32>
    %cst_40 = arith.constant dense<0.000000e+00> : vector<16x8xf32>
    %73 = tpu.matmul %71, %72, %cst_40 {dimension_numbers = #tpu.dot_dimension_numbers<[1], [0], [0], [1], [0, 0, 1, 1], [], []>} : vector<16x16xf32>, vector<16x8xf32>, vector<16x8xf32> -> vector<16x8xf32>
    %74 = vector.extract_strided_slice %5 {offsets = [0, 0], sizes = [8, 32], strides = [1, 1]} : vector<32x32xf32> to vector<8x32xf32>
    %cst_41 = arith.constant dense<0.000000e+00> : vector<16x32xf32>
    %75 = tpu.matmul %73, %74, %cst_41 {dimension_numbers = #tpu.dot_dimension_numbers<[1], [0], [0], [1], [0, 0, 1, 1], [], []>} : vector<16x8xf32>, vector<8x32xf32>, vector<16x32xf32> -> vector<16x32xf32>
    %76 = arith.addf %70, %75 : vector<16x32xf32>
    %77 = vector.extract_strided_slice %69 {offsets = [16, 0], sizes = [16, 16], strides = [1, 1]} : vector<64x16xf32> to vector<16x16xf32>
    %78 = vector.extract_strided_slice %24 {offsets = [0, 8], sizes = [16, 8], strides = [1, 1]} : vector<16x32xf32> to vector<16x8xf32>
    %cst_42 = arith.constant dense<0.000000e+00> : vector<16x8xf32>
    %79 = tpu.matmul %77, %78, %cst_42 {dimension_numbers = #tpu.dot_dimension_numbers<[1], [0], [0], [1], [0, 0, 1, 1], [], []>} : vector<16x16xf32>, vector<16x8xf32>, vector<16x8xf32> -> vector<16x8xf32>
    %80 = vector.extract_strided_slice %5 {offsets = [8, 0], sizes = [8, 32], strides = [1, 1]} : vector<32x32xf32> to vector<8x32xf32>
    %cst_43 = arith.constant dense<0.000000e+00> : vector<16x32xf32>
    %81 = tpu.matmul %79, %80, %cst_43 {dimension_numbers = #tpu.dot_dimension_numbers<[1], [0], [0], [1], [0, 0, 1, 1], [], []>} : vector<16x8xf32>, vector<8x32xf32>, vector<16x32xf32> -> vector<16x32xf32>
    %82 = arith.addf %76, %81 : vector<16x32xf32>
    %83 = vector.extract_strided_slice %69 {offsets = [32, 0], sizes = [16, 16], strides = [1, 1]} : vector<64x16xf32> to vector<16x16xf32>
    %84 = vector.extract_strided_slice %24 {offsets = [0, 16], sizes = [16, 8], strides = [1, 1]} : vector<16x32xf32> to vector<16x8xf32>
    %cst_44 = arith.constant dense<0.000000e+00> : vector<16x8xf32>
    %85 = tpu.matmul %83, %84, %cst_44 {dimension_numbers = #tpu.dot_dimension_numbers<[1], [0], [0], [1], [0, 0, 1, 1], [], []>} : vector<16x16xf32>, vector<16x8xf32>, vector<16x8xf32> -> vector<16x8xf32>
    %86 = vector.extract_strided_slice %5 {offsets = [16, 0], sizes = [8, 32], strides = [1, 1]} : vector<32x32xf32> to vector<8x32xf32>
    %cst_45 = arith.constant dense<0.000000e+00> : vector<16x32xf32>
    %87 = tpu.matmul %85, %86, %cst_45 {dimension_numbers = #tpu.dot_dimension_numbers<[1], [0], [0], [1], [0, 0, 1, 1], [], []>} : vector<16x8xf32>, vector<8x32xf32>, vector<16x32xf32> -> vector<16x32xf32>
    %88 = arith.addf %82, %87 : vector<16x32xf32>
    %89 = vector.extract_strided_slice %69 {offsets = [48, 0], sizes = [16, 16], strides = [1, 1]} : vector<64x16xf32> to vector<16x16xf32>
    %90 = vector.extract_strided_slice %24 {offsets = [0, 24], sizes = [16, 8], strides = [1, 1]} : vector<16x32xf32> to vector<16x8xf32>
    %cst_46 = arith.constant dense<0.000000e+00> : vector<16x8xf32>
    %91 = tpu.matmul %89, %90, %cst_46 {dimension_numbers = #tpu.dot_dimension_numbers<[1], [0], [0], [1], [0, 0, 1, 1], [], []>} : vector<16x16xf32>, vector<16x8xf32>, vector<16x8xf32> -> vector<16x8xf32>
    %92 = vector.extract_strided_slice %5 {offsets = [24, 0], sizes = [8, 32], strides = [1, 1]} : vector<32x32xf32> to vector<8x32xf32>
    %cst_47 = arith.constant dense<0.000000e+00> : vector<16x32xf32>
    %93 = tpu.matmul %91, %92, %cst_47 {dimension_numbers = #tpu.dot_dimension_numbers<[1], [0], [0], [1], [0, 0, 1, 1], [], []>} : vector<16x8xf32>, vector<8x32xf32>, vector<16x32xf32> -> vector<16x32xf32>
    %94 = arith.addf %88, %93 : vector<16x32xf32>
    %95 = vector.broadcast %10 : vector<1x32xf32> to vector<16x32xf32>
    %96 = arith.addf %94, %95 : vector<16x32xf32>
    %97 = arith.addf %0, %96 : vector<16x32xf32>
    %cst_48 = arith.constant dense<0.000000e+00> : vector<16xf32>
    %98 = vector.multi_reduction <add>, %97, %cst_48 [1] : vector<16x32xf32> to vector<16xf32>
    %99 = vector.shape_cast %98 : vector<16xf32> to vector<16x1xf32>
    %cst_49 = arith.constant 3.200000e+01 : f32
    %100 = vector.broadcast %cst_49 : f32 to vector<16x1xf32>
    %101 = arith.divf %99, %100 : vector<16x1xf32>
    %102 = vector.broadcast %101 : vector<16x1xf32> to vector<16x32xf32>
    %103 = arith.subf %97, %102 : vector<16x32xf32>
    %104 = arith.mulf %103, %103 : vector<16x32xf32>
    %cst_50 = arith.constant dense<0.000000e+00> : vector<16xf32>
    %105 = vector.multi_reduction <add>, %104, %cst_50 [1] : vector<16x32xf32> to vector<16xf32>
    %106 = vector.shape_cast %105 : vector<16xf32> to vector<16x1xf32>
    %cst_51 = arith.constant 3.200000e+01 : f32
    %107 = vector.broadcast %cst_51 : f32 to vector<16x1xf32>
    %108 = arith.divf %106, %107 : vector<16x1xf32>
    %109 = vector.broadcast %101 : vector<16x1xf32> to vector<16x32xf32>
    %110 = arith.subf %97, %109 : vector<16x32xf32>
    %cst_52 = arith.constant 9.99999974E-6 : f32
    %111 = vector.broadcast %cst_52 : f32 to vector<16x1xf32>
    %112 = arith.addf %108, %111 : vector<16x1xf32>
    %113 = math.rsqrt %112 : vector<16x1xf32>
    %114 = vector.broadcast %113 : vector<16x1xf32> to vector<16x32xf32>
    %115 = arith.mulf %110, %114 : vector<16x32xf32>
    %116 = vector.broadcast %11 : vector<1x32xf32> to vector<16x32xf32>
    %117 = arith.mulf %115, %116 : vector<16x32xf32>
    %118 = vector.broadcast %12 : vector<1x32xf32> to vector<16x32xf32>
    %119 = arith.addf %117, %118 : vector<16x32xf32>
    %cst_53 = arith.constant dense<0.000000e+00> : vector<16x64xf32>
    %120 = tpu.matmul %119, %3, %cst_53 {dimension_numbers = #tpu.dot_dimension_numbers<[1], [0], [0], [1], [0, 0, 1, 1], [], []>} : vector<16x32xf32>, vector<32x64xf32>, vector<16x64xf32> -> vector<16x64xf32>
    %121 = vector.broadcast %8 : vector<1x64xf32> to vector<16x64xf32>
    %122 = arith.addf %120, %121 : vector<16x64xf32>
    %cst_54 = arith.constant 0.000000e+00 : f32
    %123 = vector.broadcast %cst_54 : f32 to vector<16x64xf32>
    %124 = arith.maximumf %122, %123 : vector<16x64xf32>
    %cst_55 = arith.constant dense<0.000000e+00> : vector<16x32xf32>
    %125 = tpu.matmul %124, %6, %cst_55 {dimension_numbers = #tpu.dot_dimension_numbers<[1], [0], [0], [1], [0, 0, 1, 1], [], []>} : vector<16x64xf32>, vector<64x32xf32>, vector<16x32xf32> -> vector<16x32xf32>
    %126 = vector.broadcast %13 : vector<1x32xf32> to vector<16x32xf32>
    %127 = arith.addf %125, %126 : vector<16x32xf32>
    %128 = arith.addf %119, %127 : vector<16x32xf32>
    %cst_56 = arith.constant dense<0.000000e+00> : vector<16xf32>
    %129 = vector.multi_reduction <add>, %128, %cst_56 [1] : vector<16x32xf32> to vector<16xf32>
    %130 = vector.shape_cast %129 : vector<16xf32> to vector<16x1xf32>
    %cst_57 = arith.constant 3.200000e+01 : f32
    %131 = vector.broadcast %cst_57 : f32 to vector<16x1xf32>
    %132 = arith.divf %130, %131 : vector<16x1xf32>
    %133 = vector.broadcast %132 : vector<16x1xf32> to vector<16x32xf32>
    %134 = arith.subf %128, %133 : vector<16x32xf32>
    %135 = arith.mulf %134, %134 : vector<16x32xf32>
    %cst_58 = arith.constant dense<0.000000e+00> : vector<16xf32>
    %136 = vector.multi_reduction <add>, %135, %cst_58 [1] : vector<16x32xf32> to vector<16xf32>
    %137 = vector.shape_cast %136 : vector<16xf32> to vector<16x1xf32>
    %cst_59 = arith.constant 3.200000e+01 : f32
    %138 = vector.broadcast %cst_59 : f32 to vector<16x1xf32>
    %139 = arith.divf %137, %138 : vector<16x1xf32>
    %140 = vector.broadcast %132 : vector<16x1xf32> to vector<16x32xf32>
    %141 = arith.subf %128, %140 : vector<16x32xf32>
    %cst_60 = arith.constant 9.99999974E-6 : f32
    %142 = vector.broadcast %cst_60 : f32 to vector<16x1xf32>
    %143 = arith.addf %139, %142 : vector<16x1xf32>
    %144 = math.rsqrt %143 : vector<16x1xf32>
    %145 = vector.broadcast %144 : vector<16x1xf32> to vector<16x32xf32>
    %146 = arith.mulf %141, %145 : vector<16x32xf32>
    %147 = vector.broadcast %14 : vector<1x32xf32> to vector<16x32xf32>
    %148 = arith.mulf %146, %147 : vector<16x32xf32>
    %149 = vector.broadcast %15 : vector<1x32xf32> to vector<16x32xf32>
    %150 = arith.addf %148, %149 : vector<16x32xf32>
    %c0_61 = arith.constant 0 : index
    %c0_62 = arith.constant 0 : index
    %151 = vector.load %arg4[%c0_61, %c0_62] : memref<16x32xf32, #tpu.memory_space<vmem>>, vector<16x32xf32>
    tpu.vector_store %arg4[%c0_61, %c0_62], %150 {strides = array<i32>} : memref<16x32xf32, #tpu.memory_space<vmem>>, vector<16x32xf32>,
    return
  }
}

</mosaic_0001>

<bundles_post_ra>
// kernel: tpu_custom_call.1
= control target key start
LH: loop header
LB: loop body
LE: loop exit
PB: predicated region body
PF: predicated region fallthrough
CT: control target
= control target key end

     0   :  { %9 = vsyncpa [#allocation4], 0  ;;  %s2598_s0 = inlined_call_operand.hbm [shape: f32[16,32], index: 0, kind: input, shape index: {}]   ;;  %s2599_s1 = inlined_call_operand.hbm [shape: f32[16,32], index: 1, kind: input, shape index: {}]   ;;  %s2600_s2 = inlined_call_operand.hbm [shape: f32[96,256], index: 2, kind: input, shape index: {}]   ;;  %s2601_s3 = inlined_call_operand.vmem [shape: f32[8,128], index: 3, kind: input, shape index: {}]   ;;  %s2602_s4 = inlined_call_operand.hbm [shape: f32[16,32], index: 4, kind: output, shape index: {}]  }
   0x1   :  { %10 = vsyncpa [#allocation7], 0 }
   0x2   :  { %11 = vsyncpa [#allocation5], 0  ;;  %s2278_s15 = smov [#allocation6]   ;;  %s2279_s17 = smov [#allocation3]  }
   0x3   :  { %s29_s16 = sshll.u32 %s2278_s15, 4  ;;  %s17_s18 = sshll.u32 %s2279_s17, 4  ;;  %s30_s16 = int_to_ptr.vmem [resolvable:$true] %s29_s16  ;;  %s2320_s18 = int_to_ptr.vmem [resolvable:$true] %s17_s18 }
   0x4   :  { %s2184_s21 = scalar_lea.hbm %s2599_s1, 256 }
   0x5   :  { %p2185_p0 = scmp.ne.s32.totalorder %s2599_s1, %s2184_s21  ;;  %p2188_p1 = scmp.lt.u32.totalorder %s2184_s21, %s2599_s1 }
   0x7   :  { %p2190_p2 = pnand %p2188_p1, %p2185_p0 }
   0x9   :  { %2193 = shalt.err (!%p2190_p2)
}
   0xa   :  { %s2194_s26 = scalar_lea.vmem %s30_s16, 256  ;;  %p2199_p4 = scmp.lt.s32.totalorder %s30_s16, %s30_s16 }
   0xb   :  { %p2195_p3 = scmp.ne.s32.totalorder %s30_s16, %s2194_s26  ;;  %p2200_p5 = scmp.lt.s32.totalorder %s2194_s26, %s2194_s26 }
   0xd   :  { %p2201_p6 = por %p2200_p5, %p2199_p4 }
   0xf   :  { %p2202_p7 = pnand %p2201_p6, %p2195_p3 }
  0x11   :  { %2205 = shalt.err (!%p2202_p7)
}
  0x12   :  { %s2280_s27 = smov 128   ;;  %s2281_s28 = smov 8  }
  0x13   :  { %35 = dma.hbm_to_vmem [thread:$0]  %s2599_s1, 256, %s30_s16, [#allocation7], %s2280_s27, %s2280_s27, %s2281_s28  }
  0x14   :  { %s2206_s7 = scalar_lea.hbm %s2598_s0, 256 }
  0x15   :  { %p2207_p8 = scmp.ne.s32.totalorder %s2598_s0, %s2206_s7  ;;  %p2210_p9 = scmp.lt.u32.totalorder %s2206_s7, %s2598_s0 }
  0x17   :  { %p2212_p10 = pnand %p2210_p9, %p2207_p8 }
  0x19   :  { %2215 = shalt.err (!%p2212_p10)
}
  0x1a   :  { %s2216_s12 = scalar_lea.vmem %s2320_s18, 256  ;;  %p2221_p12 = scmp.lt.s32.totalorder %s2320_s18, %s2320_s18 }
  0x1b   :  { %p2217_p11 = scmp.ne.s32.totalorder %s2320_s18, %s2216_s12  ;;  %p2222_p13 = scmp.lt.s32.totalorder %s2216_s12, %s2216_s12 }
  0x1d   :  { %p2223_p0 = por %p2222_p13, %p2221_p12 }
  0x1f   :  { %p2224_p1 = pnand %p2223_p0, %p2217_p11 }
  0x21   :  { %2227 = shalt.err (!%p2224_p1)
}
  0x22   :  { %23 = dma.hbm_to_vmem [thread:$0]  %s2598_s0, 256, %s2320_s18, [#allocation4], %s2280_s27, %s2280_s27, %s2281_s28  }
  0x23   :  { %s2282_s14 = smov [#allocation8]   ;;  %s2228_s19 = scalar_lea.hbm %s2600_s2, 3072 }
  0x24   :  { %s41_s15 = sshll.u32 %s2282_s14, 4  ;;  %p2229_p2 = scmp.ne.s32.totalorder %s2600_s2, %s2228_s19  ;;  %s42_s15 = int_to_ptr.vmem [resolvable:$true] %s41_s15 }
  0x25   :  { %p2232_p3 = scmp.lt.u32.totalorder %s2228_s19, %s2600_s2 }
  0x27   :  { %p2234_p4 = pnand %p2232_p3, %p2229_p2 }
  0x29   :  { %2237 = shalt.err (!%p2234_p4)
}
  0x2a   :  { %s2238_s24 = scalar_lea.vmem %s42_s15, 3072  ;;  %p2243_p6 = scmp.lt.s32.totalorder %s42_s15, %s42_s15 }
  0x2b   :  { %p2239_p5 = scmp.ne.s32.totalorder %s42_s15, %s2238_s24  ;;  %p2244_p7 = scmp.lt.s32.totalorder %s2238_s24, %s2238_s24 }
  0x2d   :  { %p2245_p8 = por %p2244_p7, %p2243_p6 }
  0x2f   :  { %p2246_p9 = pnand %p2245_p8, %p2239_p5 }
  0x31   :  { %2249 = shalt.err (!%p2246_p9)
}
  0x32   :  { %s2283_s0 = smov 256   ;;  %s2284_s18 = smov 16  }
  0x33   :  { %47 = dma.hbm_to_vmem [thread:$0]  %s2600_s2, 3072, %s42_s15, [#allocation7], %s2283_s0, %s2283_s0, %s2284_s18  }
  0x34   :  { %2272 = dma.done.wait [#allocation4], 256  }
  0x35   :  { %2273 = vsyncadd [#allocation4], 4294967040 }
  0x36   :  { %2274 = dma.done.wait [#allocation7], 3328  }
  0x37   :  { %2275 = vsyncadd [#allocation7], 4294963968  ;;  %v2369_v0 = vld [vmem:[#allocation8] sm:$0xff]  ;;  %v2371_v1 = vld [vmem:[#allocation8 + $0x10] sm:$0xff]  ;;  %vm93_vm0 = vcmask 261120   ;;  %vm278_vm1 = vcmask 64512   ;;  %v260_v54 = vlaneseq }
  0x38   :  { %v2373_v2 = vld [vmem:[#allocation8 + $0x20] sm:$0xff]  ;;  %v2134_v3 = vpack.i.bf16 %v2371_v1, %v2369_v0  ;;  %v1996_v4 = vpack.c.bf16 %v2371_v1, %v2369_v0  ;;  %v2379_v5 = vld [vmem:[#allocation8 + $0x30] sm:$0xff]  ;;  %v2387_v10 = vld [vmem:[#allocation3 + $0x8] sm:$0xff]  ;;  %s2285_s30 = smov 120   ;;  %s2286_s5 = smov 88   ;;  %vm362_vm5 = vcmask 130048  }
  0x39   :  { %v2381_v6 = vld [vmem:[#allocation3] sm:$0xff]  ;;  %v61_v7 = vld [vmem:[#allocation6] sm:$0xff]  ;;  %v2000_v8 = vpack.c.bf16 %v2379_v5, %v2373_v2  ;;  %v62_v11 = vld [vmem:[#allocation6 + $0x8] sm:$0xff]  ;;  %s2287_s6 = smov 96   ;;  %s2288_s7 = smov 72   ;;  %v261_v55 = vshrl.u32 %v260_v54, 7 }
  0x3a   :  { %v87_v9 = vadd.f32 %v61_v7, %v2381_v6  ;;  %1997 = vmatprep.subr.bf16.mxu1 %v1996_v4  ;;  %v88_v12 = vadd.f32 %v62_v11, %v2387_v10  ;;  %v2393_v13 = vld [vmem:[#allocation8 + $0x8] sm:$0xff]  ;;  %v2395_v14 = vld [vmem:[#allocation8 + $0x18] sm:$0xff]  ;;  %v2410_v19 = vld [vmem:[%s2601_s3] ss:$0 sm:$0xff]  ;;  %s2289_s8 = smov 80   ;;  %s2290_s9 = smov 112  }
  0x3b   :  { %1999 = vmatpush3.bf16.msra.mxu1 %v1996_v4  ;;  %v2397_v15 = vld [vmem:[#allocation8 + $0x28] sm:$0xff]  ;;  %v2004_v16 = vpack.c.bf16 %v2395_v14, %v2393_v13  ;;  %v2401_v17 = vld [vmem:[#allocation8 + $0x38] sm:$0xff]  ;;  %s2291_s10 = smov 104   ;;  %vm2425_vm2 = vmpackc.low %vm278_vm1, %vm278_vm1  ;;  %v262_v56 = vadd.s32 8, %v261_v55  ;;  %v264_v57 = vand.u32 127, %v260_v54  ;;  %v265_v60 = vand.u32 1, %v261_v55 }
  0x3c   :  { %1876 = vmatprep.mubr.msk.f32.mxu1 %vm93_vm0, %v87_v9  ;;  %2001 = vmatprep.subr.bf16.mxu1 %v2000_v8  ;;  %v2008_v18 = vpack.c.bf16 %v2401_v17, %v2397_v15  ;;  %v1751_v42 = vld [vmem:[%s2601_s3 + $0x1] ss:$0 sm:$0xff]  ;;  %v2292_v61 = vmov -1e+30   ;;  %s2293_s14 = smov 64   ;;  %vm1606_vm6 = vcmask 523264  }
  0x3d   :  { %v266_v58 = vand.u32 1, %v262_v56  ;;  %v267_v59 = vand.u32 1, %v264_v57  ;;  %s2294_s18 = smov [#allocation9]  }
  0x3e   :  { %s1735_s25 = sshll.u32 %s2294_s18, 4  ;;  %s1736_s25 = int_to_ptr.vmem [resolvable:$true] %s1735_s25 }
  0x3f   :  { %2003 = vmatpush3.bf16.msra.mxu1 %v2000_v8  ;;  %vm269_vm3 = vcmp.eq.s32.totalorder %v266_v58, %v267_v59  ;;  %vm268_vm4 = vcmp.eq.s32.totalorder %v265_v60, %v267_v59  ;;  %s2250_s26 = scalar_lea.vmem %s1736_s25, 256  ;;  %p2255_p11 = scmp.lt.s32.totalorder %s1736_s25, %s1736_s25 }
  0x40   :  { %2005 = vmatprep.subr.bf16.mxu1 %v2004_v16  ;;  %v271_v62 = vsel %vm269_vm3, 0.0, %v2292_v61  ;;  %v270_v63 = vsel %vm268_vm4, 0.0, %v2292_v61  ;;  %p2251_p10 = scmp.ne.s32.totalorder %s1736_s25, %s2250_s26  ;;  %p2256_p12 = scmp.lt.s32.totalorder %s2250_s26, %s2250_s26 }
  0x42   :  { %1877 = vmatmul.mubr.msk.f32.vlgmr.msra.gmra.mrb[0].mxu1 %vm93_vm0, %v88_v12  ;;  %p2257_p13 = por %p2256_p12, %p2255_p11 }
  0x43   :  { %1887 = vmatprep.mubr.msk.f32.mxu1 %vm93_vm0, %v2381_v6  ;;  %2007 = vmatpush3.bf16.msra.mxu1 %v2004_v16 }
  0x44   :  { %2009 = vmatprep.subr.bf16.mxu1 %v2008_v18  ;;  %p2258_p0 = pnand %p2257_p13, %p2251_p10 }
  0x47   :  { %2011 = vmatpush3.bf16.msra.mxu1 %v2008_v18 }
  0x4a   :  { %1888 = vmatmul.mubr.msk.f32.vlgmr.msra.gmra.mrb[2].mxu1 %vm93_vm0, %v2387_v10 }
 0x115   :  { %v1878_v20 = vpop.f32.mrb[0].mxu1 }
 0x116   :  { %v172_v21 = vadd.f32 %v1878_v20, %v2410_v19  ;;  %v166_v22 = vpop.f32.mrb[1].mxu1 }
 0x117   :  { %v167_v23 = vadd.f32 %v2410_v19, %v166_v22 }
 0x119   :  { %365 = vrot.lane.b32.xlu1 %v167_v23, %s2285_s30  ;;  %1894 = vmatprep.mubr.msk.f32.mxu0 %vm278_vm1, %v167_v23  ;;  %v2099_v24 = vpack.i.bf16 %v172_v21, %v167_v23 }
 0x11b   :  { %2100 = vrot.lane.b32.xlu0 %v2099_v24, %s2286_s5 }
 0x11d   :  { %367 = vrot.lane.b32.xlu1 %v172_v21, %s2285_s30  ;;  %v1889_v25 = vpop.f32.mrb[2].mxu1 }
 0x11e   :  { %v251_v26 = vpop.f32.mrb[3].mxu1  ;;  %v2442_v47 = vadd.f32 %v1889_v25, %v1751_v42 }
 0x11f   :  { %2105 = vrot.lane.b32.xlu0 %v2099_v24, %s2287_s6  ;;  %v2444_v48 = vadd.f32 %v1751_v42, %v251_v26 }
 0x121   :  { %2115 = vrot.lane.b32.xlu1 %v2099_v24, %s2288_s7  ;;  %v2036_v51 = vpack.c.bf16 %v2442_v47, %v2444_v48 }
 0x123   :  { %2110 = vrot.lane.b32.xlu0 %v2099_v24, %s2289_s8 }
 0x125   :  { %460 = vrot.lane.b32.xlu1 %v172_v21, %s2290_s9 }
 0x127   :  { %458 = vrot.lane.b32.xlu0 %v167_v23, %s2290_s9 }
 0x129   :  { %553 = vrot.lane.b32.xlu1 %v172_v21, %s2291_s10 }
 0x12b   :  { %551 = vrot.lane.b32.xlu0 %v167_v23, %s2291_s10 }
 0x18b   :  { %v366_v27 = vpop.permute.xlu1 %365 }
 0x18c   :  { %1901 = vmatprep.mubr.msk.f32.mxu1 %vm278_vm1, %v366_v27 }
 0x18d   :  { %v2101_v28 = vpop.permute.xlu0 %2100 }
 0x18e   :  { %v2103_v29 = vunpack.i.h.bf16 %v2101_v28  ;;  %v2102_v30 = vunpack.i.l.bf16 %v2101_v28 }
 0x18f   :  { %v368_v31 = vpop.permute.xlu1 %367 }
 0x190   :  { %v2018_v33 = vpack.c.bf16 %v2103_v29, %v2102_v30 }
 0x191   :  { %v2106_v34 = vpop.permute.xlu0 %2105 }
 0x192   :  { %v2108_v35 = vunpack.i.h.bf16 %v2106_v34  ;;  %v2107_v36 = vunpack.i.l.bf16 %v2106_v34  ;;  %2020 = vmatprep.subr.msk.bf16.mxu1 %vm2425_vm2, %v2018_v33 }
 0x193   :  { %v2116_v37 = vpop.permute.xlu1 %2115  ;;  %2023 = vmatpush3.bf16.xpose.msk.msra.mxu1 %vm2425_vm2, %v2018_v33 }
 0x194   :  { %v2118_v38 = vunpack.i.h.bf16 %v2116_v37  ;;  %v2117_v39 = vunpack.i.l.bf16 %v2116_v37  ;;  %v2012_v40 = vpack.c.bf16 %v2108_v35, %v2107_v36 }
 0x195   :  { %v2111_v41 = vpop.permute.xlu0 %2110 }
 0x196   :  { %v2030_v43 = vpack.c.bf16 %v2118_v38, %v2117_v39  ;;  %v2113_v44 = vunpack.i.h.bf16 %v2111_v41  ;;  %v2112_v45 = vunpack.i.l.bf16 %v2111_v41  ;;  %2014 = vmatprep.subr.msk.bf16.mxu0 %vm2425_vm2, %v2012_v40 }
 0x197   :  { %2017 = vmatpush3.bf16.xpose.msk.msra.mxu0 %vm2425_vm2, %v2012_v40  ;;  %v461_v50 = vpop.permute.xlu1 %460 }
 0x198   :  { %v2024_v46 = vpack.c.bf16 %v2113_v44, %v2112_v45  ;;  %2032 = vmatprep.subr.msk.bf16.mxu1 %vm2425_vm2, %v2030_v43 }
 0x199   :  { %v459_v49 = vpop.permute.xlu0 %458 }
 0x19a   :  { %1902 = vmatmul.mubr.msk.f32.vlgmr.msra.gmra.mrb[4].mxu1 %vm278_vm1, %v368_v31  ;;  %2026 = vmatprep.subr.msk.bf16.mxu0 %vm2425_vm2, %v2024_v46 }
 0x19b   :  { %2035 = vmatpush3.bf16.xpose.msk.msra.mxu1 %vm2425_vm2, %v2030_v43  ;;  %v554_v53 = vpop.permute.xlu1 %553 }
 0x19d   :  { %v552_v52 = vpop.permute.xlu0 %551 }
 0x19e   :  { %1895 = vmatmul.mubr.msk.f32.vlgmr.msra.gmra.mrb[0].mxu0 %vm278_vm1, %v172_v21  ;;  %1915 = vmatprep.mubr.msk.f32.mxu1 %vm278_vm1, %v552_v52 }
 0x19f   :  { %2029 = vmatpush3.bf16.xpose.msk.msra.mxu0 %vm2425_vm2, %v2024_v46  ;;  %1908 = vmatprep.mubr.msk.f32.mxu0 %vm278_vm1, %v459_v49 }
 0x1a0   :  { %2037 = vmatprep.subr.bf16.mxu0 %v2036_v51 }
 0x1a2   :  { %1916 = vmatmul.mubr.msk.f32.vlgmr.msra.gmra.mrb[6].mxu1 %vm278_vm1, %v554_v53 }
 0x1a6   :  { %1909 = vmatmul.mubr.msk.f32.vlgmr.msra.gmra.mrb[2].mxu0 %vm278_vm1, %v461_v50 }
 0x1a7   :  { %2039 = vmatpush3.bf16.msra.mxu0 %v2036_v51 }
 0x26d   :  { %v1903_v4 = vpop.f32.mrb[4].mxu1 }
 0x26e   :  { %v453_v7 = vadd.f32 %v1903_v4, %v271_v62  ;;  %v447_v8 = vpop.f32.mrb[5].mxu1 }
 0x26f   :  { %v448_v9 = vadd.f32 %v447_v8, %v270_v63 }
 0x270   :  { %457 = vst.msk [vmem:[#allocation2 + $0x18] sm:$0xff] %vm362_vm5, %v453_v7 }
 0x271   :  { %456 = vst.msk [vmem:[#allocation2 + $0x10] sm:$0xff] %vm362_vm5, %v448_v9  ;;  %v1896_v11 = vpop.f32.mrb[0].mxu0 }
 0x272   :  { %v359_v12 = vadd.f32 %v1896_v11, %v271_v62  ;;  %v353_v16 = vpop.f32.mrb[1].mxu0 }
 0x273   :  { %v354_v18 = vadd.f32 %v353_v16, %v270_v63 }
 0x274   :  { %364 = vst.msk [vmem:[#allocation2 + $0x8] sm:$0xff] %vm362_vm5, %v359_v12 }
 0x275   :  { %363 = vst.msk [vmem:[#allocation2] sm:$0xff] %vm362_vm5, %v354_v18  ;;  %v1917_v20 = vpop.f32.mrb[6].mxu1  ;;  %v2119_v18 = vpack.i.bf16 %v2442_v47, %v2444_v48 }
 0x276   :  { %v639_v21 = vadd.f32 %v1917_v20, %v271_v62  ;;  %v633_v22 = vpop.f32.mrb[7].mxu1 }
 0x277   :  { %v634_v23 = vadd.f32 %v633_v22, %v270_v63  ;;  %v647_v24 = vld [vmem:[#allocation2 + $0x18] sm:$0xff] }
 0x278   :  { %643 = vst.msk [vmem:[#allocation2 + $0x38] sm:$0xff] %vm362_vm5, %v639_v21  ;;  %v661_v25 = vsel %vm362_vm5, %v647_v24, -inf  ;;  %v646_v26 = vld [vmem:[#allocation2 + $0x10] sm:$0xff] }
 0x279   :  { %642 = vst.msk [vmem:[#allocation2 + $0x30] sm:$0xff] %vm362_vm5, %v634_v23  ;;  %662 = vmax.xlane.f32.xlu1 %v661_v25  ;;  %v1910_v27 = vpop.f32.mrb[2].mxu0  ;;  %v658_v28 = vsel %vm362_vm5, %v646_v26, -inf }
 0x27a   :  { %v546_v29 = vadd.f32 %v1910_v27, %v271_v62  ;;  %659 = vmax.xlane.f32.xlu0 %v658_v28  ;;  %v540_v30 = vpop.f32.mrb[3].mxu0 }
 0x27b   :  { %v541_v31 = vadd.f32 %v540_v30, %v270_v63  ;;  %v645_v34 = vld [vmem:[#allocation2 + $0x8] sm:$0xff] }
 0x27c   :  { %550 = vst.msk [vmem:[#allocation2 + $0x28] sm:$0xff] %vm362_vm5, %v546_v29  ;;  %v644_v32 = vld [vmem:[#allocation2] sm:$0xff]  ;;  %v655_v35 = vsel %vm362_vm5, %v645_v34, -inf }
 0x27d   :  { %549 = vst.msk [vmem:[#allocation2 + $0x20] sm:$0xff] %vm362_vm5, %v541_v31  ;;  %v652_v33 = vsel %vm362_vm5, %v644_v32, -inf }
 0x27e   :  { %653 = vmax.xlane.f32.xlu0 %v652_v33 }
 0x27f   :  { %v651_v41 = vld [vmem:[#allocation2 + $0x38] sm:$0xff] }
 0x280   :  { %v650_v40 = vld [vmem:[#allocation2 + $0x30] sm:$0xff]  ;;  %v673_v43 = vsel %vm362_vm5, %v651_v41, -inf }
 0x281   :  { %v670_v42 = vsel %vm362_vm5, %v650_v40, -inf }
 0x282   :  { %656 = vmax.xlane.f32.xlu0 %v655_v35 }
 0x283   :  { %v649_v36 = vld [vmem:[#allocation2 + $0x28] sm:$0xff] }
 0x284   :  { %v648_v37 = vld [vmem:[#allocation2 + $0x20] sm:$0xff]  ;;  %v667_v38 = vsel %vm362_vm5, %v649_v36, -inf }
 0x285   :  { %v664_v39 = vsel %vm362_vm5, %v648_v37, -inf }
 0x286   :  { %665 = vmax.xlane.f32.xlu1 %v664_v39  ;;  %668 = vmax.xlane.f32.xlu0 %v667_v38 }
 0x28a   :  { %671 = vmax.xlane.f32.xlu1 %v670_v42  ;;  %674 = vmax.xlane.f32.xlu0 %v673_v43 }
 0x306   :  { %v663_v44 = vpop.xlane.xlu1 %662 }
 0x307   :  { %v679_v45 = vsub.f32 %v647_v24, %v663_v44  ;;  %v660_v46 = vpop.xlane.xlu0 %659 }
 0x308   :  { %v678_v49 = vsub.f32 %v646_v26, %v660_v46 }
 0x309   :  { %v690_v50 = vmul.f32 1.442695, %v679_v45 }
 0x30a   :  { %v688_v51 = vmul.f32 1.442695, %v678_v49 }
 0x30b   :  { %2144 = vpow2.f32 %v690_v50  ;;  %v654_v52 = vpop.xlane.xlu0 %653 }
 0x30c   :  { %2146 = vpow2.f32 %v688_v51  ;;  %v676_v22 = vsub.f32 %v644_v32, %v654_v52 }
 0x30e   :  { %v684_v23 = vmul.f32 1.442695, %v676_v22 }
 0x30f   :  { %v657_v53 = vpop.xlane.xlu0 %656 }
 0x310   :  { %v677_v54 = vsub.f32 %v645_v34, %v657_v53 }
 0x312   :  { %v686_v55 = vmul.f32 1.442695, %v677_v54 }
 0x313   :  { %v669_v56 = vpop.xlane.xlu0 %668  ;;  %v666_v21 = vpop.xlane.xlu1 %665 }
 0x314   :  { %2148 = vpow2.f32 %v686_v55  ;;  %v681_v57 = vsub.f32 %v649_v36, %v669_v56  ;;  %v680_v24 = vsub.f32 %v648_v37, %v666_v21 }
 0x315   :  { %v2476_v58 = vpop.eup %2144 }
 0x316   :  { %v2478_v59 = vpop.eup %2146  ;;  %v694_v60 = vmul.f32 1.442695, %v681_v57  ;;  %v709_v61 = vsel %vm362_vm5, %v2476_v58, 0.0  ;;  %v692_v26 = vmul.f32 1.442695, %v680_v24 }
 0x317   :  { %710 = vadd.xlane.f32.xlu0 %v709_v61  ;;  %v675_v62 = vpop.xlane.xlu0 %674  ;;  %v706_v63 = vsel %vm362_vm5, %v2478_v59, 0.0  ;;  %v672_v25 = vpop.xlane.xlu1 %671 }
 0x318   :  { %v683_v4 = vsub.f32 %v651_v41, %v675_v62  ;;  %707 = vadd.xlane.f32.xlu1 %v706_v63  ;;  %2150 = vpow2.f32 %v694_v60  ;;  %v682_v27 = vsub.f32 %v650_v40, %v672_v25 }
 0x31a   :  { %v698_v7 = vmul.f32 1.442695, %v683_v4  ;;  %v696_v28 = vmul.f32 1.442695, %v682_v27 }
 0x31c   :  { %2152 = vpow2.f32 %v698_v7 }
 0x31d   :  { %2154 = vpow2.f32 %v684_v23 }
 0x31e   :  { %v2484_v8 = vpop.eup %2148  ;;  %2156 = vpow2.f32 %v692_v26 }
 0x31f   :  { %v703_v9 = vsel %vm362_vm5, %v2484_v8, 0.0  ;;  %2158 = vpow2.f32 %v696_v28 }
 0x320   :  { %704 = vadd.xlane.f32.xlu0 %v703_v9 }
 0x322   :  { %v2488_v11 = vpop.eup %2150 }
 0x323   :  { %v715_v12 = vsel %vm362_vm5, %v2488_v11, 0.0 }
 0x324   :  { %716 = vadd.xlane.f32.xlu0 %v715_v12 }
 0x326   :  { %v2492_v16 = vpop.eup %2152 }
 0x327   :  { %v721_v20 = vsel %vm362_vm5, %v2492_v16, 0.0  ;;  %v2504_v47 = vpop.eup %2154 }
 0x328   :  { %722 = vadd.xlane.f32.xlu0 %v721_v20  ;;  %v700_v48 = vsel %vm362_vm5, %v2504_v47, 0.0  ;;  %v2508_v29 = vpop.eup %2156 }
 0x329   :  { %2120 = vrot.lane.b32.xlu1 %v2119_v18, %s2285_s30  ;;  %v712_v30 = vsel %vm362_vm5, %v2508_v29, 0.0  ;;  %v2512_v31 = vpop.eup %2158 }
 0x33e   :  { %2125 = vrot.lane.b32.xlu0 %v2119_v18, %s2290_s9 }
 0x342   :  { %1020 = vrot.lane.b32.xlu0 %v2393_v13, %s2287_s6  ;;  %v718_v13 = vsel %vm362_vm5, %v2512_v31, 0.0 }
 0x346   :  { %1366 = vrot.lane.b32.xlu0 %v2401_v17, %s2287_s6 }
 0x34d   :  { %701 = vadd.xlane.f32.xlu1 %v700_v48 }
 0x351   :  { %713 = vadd.xlane.f32.xlu1 %v712_v30 }
 0x355   :  { %719 = vadd.xlane.f32.xlu1 %v718_v13 }
 0x366   :  { %2130 = vrot.lane.b32.xlu1 %v2119_v18, %s2291_s10 }
 0x36a   :  { %935 = vrot.lane.b32.xlu1 %v2395_v14, %s2287_s6 }
 0x36e   :  { %1192 = vrot.lane.b32.xlu1 %v2397_v15, %s2287_s6 }
 0x3a4   :  { %v711_v17 = vpop.xlane.xlu0 %710 }
 0x3a5   :  { %2160 = vrcp.f32 %v711_v17  ;;  %v708_v32 = vpop.xlane.xlu1 %707 }
 0x3a6   :  { %2162 = vrcp.f32 %v708_v32 }
 0x3a9   :  { %v2121_v33 = vpop.permute.xlu1 %2120 }
 0x3aa   :  { %v2123_v34 = vunpack.i.h.bf16 %v2121_v33  ;;  %v2122_v35 = vunpack.i.l.bf16 %v2121_v33 }
 0x3ac   :  { %v2040_v36 = vpack.c.bf16 %v2123_v34, %v2122_v35 }
 0x3ad   :  { %v705_v37 = vpop.xlane.xlu0 %704 }
 0x3ae   :  { %2041 = vmatprep.subr.bf16.mxu1 %v2040_v36  ;;  %2164 = vrcp.f32 %v705_v37 }
 0x3af   :  { %v2161_v38 = vpop.eup %2160  ;;  %2043 = vmatpush3.bf16.msra.mxu1 %v2040_v36 }
 0x3b0   :  { %v2163_v39 = vpop.eup %2162  ;;  %v735_v40 = vmul.f32 %v2161_v38, %v711_v17 }
 0x3b1   :  { %v734_v41 = vmul.f32 %v2163_v39, %v708_v32  ;;  %v717_v14 = vpop.xlane.xlu0 %716 }
 0x3b2   :  { %v743_v42 = vsub.f32 2.0, %v735_v40  ;;  %2166 = vrcp.f32 %v717_v14 }
 0x3b3   :  { %v742_v43 = vsub.f32 2.0, %v734_v41 }
 0x3b4   :  { %v751_v44 = vmul.f32 %v2161_v38, %v743_v42 }
 0x3b5   :  { %v750_v15 = vmul.f32 %v2163_v39, %v742_v43  ;;  %v723_v45 = vpop.xlane.xlu0 %722 }
 0x3b6   :  { %v759_v49 = vmul.f32 %v2476_v58, %v751_v44 }
 0x3b7   :  { %v758_v46 = vmul.f32 %v2478_v59, %v750_v15 }
 0x3b8   :  { %v2165_v55 = vpop.eup %2164 }
 0x3b9   :  { %1929 = vmatprep.mubr.msk.f32.mxu1 %vm362_vm5, %v758_v46  ;;  %v2126_v50 = vpop.permute.xlu0 %2125  ;;  %v733_v57 = vmul.f32 %v2165_v55, %v705_v37 }
 0x3ba   :  { %1930 = vmatmul.mubr.msk.f32.vlgmr.msra.gmra.mrb[8].mxu1 %vm362_vm5, %v759_v49  ;;  %v2128_v51 = vunpack.i.h.bf16 %v2126_v50  ;;  %v2127_v52 = vunpack.i.l.bf16 %v2126_v50 }
 0x3bb   :  { %v741_v61 = vsub.f32 2.0, %v733_v57 }
 0x3bc   :  { %v2044_v53 = vpack.c.bf16 %v2128_v51, %v2127_v52  ;;  %v2167_v58 = vpop.eup %2166 }
 0x3bd   :  { %v737_v62 = vmul.f32 %v2167_v58, %v717_v14  ;;  %v749_v21 = vmul.f32 %v2165_v55, %v741_v61 }
 0x3be   :  { %2045 = vmatprep.subr.bf16.mxu1 %v2044_v53 }
 0x3bf   :  { %2047 = vmatpush3.bf16.msra.mxu1 %v2044_v53  ;;  %v745_v22 = vsub.f32 2.0, %v737_v62  ;;  %v757_v13 = vmul.f32 %v2484_v8, %v749_v21 }
 0x3c1   :  { %v753_v17 = vmul.f32 %v2167_v58, %v745_v22  ;;  %v75_v22 = vld [vmem:[#allocation8 + $0x80] sm:$0xff] }
 0x3c3   :  { %v761_v37 = vmul.f32 %v2488_v11, %v753_v17 }
 0x3da   :  { %v702_v54 = vpop.xlane.xlu1 %701 }
 0x3db   :  { %2168 = vrcp.f32 %v702_v54 }
 0x3dc   :  { %2170 = vrcp.f32 %v723_v45 }
 0x3de   :  { %v714_v56 = vpop.xlane.xlu1 %713 }
 0x3df   :  { %2172 = vrcp.f32 %v714_v56 }
 0x3e2   :  { %v720_v59 = vpop.xlane.xlu1 %719 }
 0x3e3   :  { %2174 = vrcp.f32 %v720_v59 }
 0x3e5   :  { %v2169_v60 = vpop.eup %2168 }
 0x3e6   :  { %v2171_v63 = vpop.eup %2170  ;;  %v732_v4 = vmul.f32 %v2169_v60, %v702_v54  ;;  %v2131_v7 = vpop.permute.xlu1 %2130 }
 0x3e7   :  { %v2133_v9 = vunpack.i.h.bf16 %v2131_v7  ;;  %v2132_v12 = vunpack.i.l.bf16 %v2131_v7  ;;  %v739_v23 = vmul.f32 %v2171_v63, %v723_v45  ;;  %v1786_v45 = vld [vmem:[%s2601_s3 + $0x2] ss:$0 sm:$0xff] }
 0x3e8   :  { %v740_v18 = vsub.f32 2.0, %v732_v4  ;;  %v71_v7 = vld [vmem:[#allocation8 + $0x40] sm:$0xff] }
 0x3e9   :  { %v2173_v20 = vpop.eup %2172  ;;  %v2048_v24 = vpack.c.bf16 %v2133_v9, %v2132_v12  ;;  %v747_v32 = vsub.f32 2.0, %v739_v23  ;;  %v72_v9 = vld [vmem:[#allocation8 + $0x50] sm:$0xff]  ;;  %v73_v12 = vld [vmem:[#allocation8 + $0x60] sm:$0xff] }
 0x3ea   :  { %v748_v25 = vmul.f32 %v2169_v60, %v740_v18  ;;  %v736_v26 = vmul.f32 %v2173_v20, %v714_v56  ;;  %v936_v27 = vpop.permute.xlu1 %935  ;;  %v2060_v18 = vpack.c.bf16 %v72_v9, %v71_v7  ;;  %v76_v23 = vld [vmem:[#allocation8 + $0x90] sm:$0xff] }
 0x3eb   :  { %2049 = vmatprep.subr.bf16.mxu1 %v2048_v24  ;;  %1932 = vmatprep.subr.mxu0 %v936_v27  ;;  %v755_v38 = vmul.f32 %v2171_v63, %v747_v32 }
 0x3ec   :  { %v756_v28 = vmul.f32 %v2504_v47, %v748_v25  ;;  %v744_v48 = vsub.f32 2.0, %v736_v26 }
 0x3ed   :  { %v2175_v30 = vpop.eup %2174  ;;  %v763_v39 = vmul.f32 %v2492_v16, %v755_v38 }
 0x3ee   :  { %v752_v33 = vmul.f32 %v2173_v20, %v744_v48  ;;  %v738_v34 = vmul.f32 %v2175_v30, %v720_v59  ;;  %1922 = vmatprep.mubr.msk.f32.mxu0 %vm362_vm5, %v756_v28  ;;  %v1193_v11 = vpop.permute.xlu1 %1192  ;;  %v74_v20 = vld [vmem:[#allocation8 + $0x70] sm:$0xff] }
 0x3ef   :  { %1923 = vmatmul.mubr.msk.f32.vlgmr.msra.gmra.mrb[4].mxu0 %vm362_vm5, %v757_v13  ;;  %v2064_v21 = vpack.c.bf16 %v74_v20, %v73_v12 }
 0x3f0   :  { %v760_v35 = vmul.f32 %v2508_v29, %v752_v33  ;;  %v746_v36 = vsub.f32 2.0, %v738_v34  ;;  %1933 = vmatpush3.msra.mxu0 %v936_v27  ;;  %v1021_v29 = vpop.permute.xlu0 %1020  ;;  %v1787_v33 = vld [vmem:[%s2601_s3 + $0x3] ss:$0 sm:$0xff] }
 0x3f1   :  { %1937 = vmatprep.subr.mxu0 %v1021_v29 }
 0x3f2   :  { %v754_v47 = vmul.f32 %v2175_v30, %v746_v36  ;;  %1946 = vmatprep.mubr.msk.f32.mxu1 %vm362_vm5, %v760_v35 }
 0x3f3   :  { %1947 = vmatmul.mubr.msk.f32.vlgmr.msra.gmra.mrb[10].mxu1 %vm362_vm5, %v761_v37  ;;  %v1788_v37 = vld [vmem:[%s2601_s3 + $0x4] ss:$0 sm:$0xff] }
 0x3f4   :  { %v762_v8 = vmul.f32 %v2512_v31, %v754_v47  ;;  %2051 = vmatpush3.bf16.msra.mxu1 %v2048_v24  ;;  %v1367_v16 = vpop.permute.xlu0 %1366 }
 0x3f6   :  { %1958 = vmatprep.mubr.msk.f32.mxu1 %vm362_vm5, %v762_v8 }
 0x3f7   :  { %1959 = vmatmul.mubr.msk.f32.vlgmr.msra.gmra.mrb[12].mxu1 %vm362_vm5, %v763_v39 }
 0x48d   :  { %v1931_v40 = vpop.f32.mrb[8].mxu1 }
 0x48e   :  { %v925_v41 = vpop.f32.mrb[9].mxu1 }
 0x48f   :  { %1934 = vmatprep.mubr.msk.f32.mxu0 %vm278_vm1, %v925_v41 }
 0x490   :  { %1935 = vmatmul.mubr.msk.f32.vlgmr.msra.gmra.mrb[6].mxu0 %vm278_vm1, %v1931_v40  ;;  %v78_v40 = vld [vmem:[#allocation8 + $0xb0] sm:$0xff] }
 0x491   :  { %1938 = vmatpush3.msra.mxu0 %v1021_v29  ;;  %v77_v29 = vld [vmem:[#allocation8 + $0xa0] sm:$0xff] }
 0x492   :  { %1949 = vmatprep.subr.mxu0 %v1193_v11  ;;  %v2072_v41 = vpack.c.bf16 %v78_v40, %v77_v29 }
 0x4c2   :  { %v1924_v42 = vpop.f32.mrb[4].mxu0 }
 0x4c3   :  { %v836_v31 = vpop.f32.mrb[5].mxu0 }
 0x4c4   :  { %1939 = vmatprep.mubr.msk.f32.mxu0 %vm278_vm1, %v836_v31 }
 0x4c5   :  { %1940 = vmatmul.mubr.msk.f32.vlgmr.msra.gmra.mrb[6].mxu0 %vm278_vm1, %v1924_v42 }
 0x4c6   :  { %1950 = vmatpush3.msra.mxu0 %v1193_v11  ;;  %v1948_v14 = vpop.f32.mrb[10].mxu1 }
 0x4c7   :  { %v1182_v43 = vpop.f32.mrb[11].mxu1  ;;  %1961 = vmatprep.subr.mxu0 %v1367_v16 }
 0x4c8   :  { %1951 = vmatprep.mubr.msk.f32.mxu0 %vm278_vm1, %v1182_v43 }
 0x4ca   :  { %v1960_v44 = vpop.f32.mrb[12].mxu1 }
 0x4cb   :  { %v1356_v15 = vpop.f32.mrb[13].mxu1 }
 0x4cd   :  { %1952 = vmatmul.mubr.msk.f32.vlgmr.msra.gmra.mrb[6].mxu0 %vm278_vm1, %v1948_v14 }
 0x4ce   :  { %1962 = vmatpush3.msra.mxu0 %v1367_v16  ;;  %1963 = vmatprep.mubr.msk.f32.mxu0 %vm278_vm1, %v1356_v15  ;;  %v1791_v15 = vld [vmem:[%s2601_s3 + $0x5] ss:$0 sm:$0xff] }
 0x4cf   :  { %2061 = vmatprep.subr.bf16.mxu0 %v2060_v18 }
 0x4d5   :  { %1964 = vmatmul.mubr.msk.f32.vlgmr.msra.gmra.mrb[6].mxu0 %vm278_vm1, %v1960_v44 }
 0x4d6   :  { %2063 = vmatpush3.bf16.msra.mxu0 %v2060_v18 }
 0x4d7   :  { %2065 = vmatprep.subr.bf16.mxu0 %v2064_v21 }
 0x4da   :  { %2067 = vmatpush3.bf16.msra.mxu0 %v2064_v21  ;;  %v1794_v21 = vld [vmem:[%s2601_s3 + $0x6] ss:$0 sm:$0xff] }
 0x5a8   :  { %v1965_v46 = vpop.f32.mrb[6].mxu0 }
 0x5a9   :  { %v1457_v49 = vadd.f32 %v1965_v46, %v1786_v45  ;;  %v1441_v50 = vpop.f32.mrb[7].mxu0 }
 0x5aa   :  { %v1456_v51 = vadd.f32 %v1786_v45, %v1441_v50 }
 0x5ab   :  { %v1459_v52 = vadd.f32 %v1457_v49, %v2387_v10 }
 0x5ac   :  { %v1458_v53 = vadd.f32 %v1456_v51, %v2381_v6  ;;  %v2139_v6 = vpack.i.bf16 %v2379_v5, %v2373_v2  ;;  %v2068_v2 = vpack.c.bf16 %v76_v23, %v75_v22  ;;  %v1795_v23 = vld [vmem:[%s2601_s3 + $0x7] ss:$0 sm:$0xff] }
 0x5ad   :  { %v1463_v54 = vsel %vm93_vm0, %v1459_v52, 0.0 }
 0x5ae   :  { %1464 = vadd.xlane.f32.xlu0 %v1463_v54  ;;  %v1460_v55 = vsel %vm93_vm0, %v1458_v53, 0.0  ;;  %2069 = vmatprep.subr.bf16.mxu0 %v2068_v2 }
 0x5af   :  { %1461 = vadd.xlane.f32.xlu1 %v1460_v55  ;;  %2071 = vmatpush3.bf16.msra.mxu0 %v2068_v2 }
 0x5b0   :  { %2073 = vmatprep.subr.bf16.mxu0 %v2072_v41 }
 0x5b3   :  { %2075 = vmatpush3.bf16.msra.mxu0 %v2072_v41 }
 0x63b   :  { %v1465_v56 = vpop.xlane.xlu0 %1464 }
 0x63c   :  { %v1468_v57 = vmul.f32 0.03125, %v1465_v56  ;;  %v1462_v58 = vpop.xlane.xlu1 %1461 }
 0x63d   :  { %v1467_v59 = vmul.f32 0.03125, %v1462_v58 }
 0x63e   :  { %v1470_v60 = vsub.f32 %v1459_v52, %v1468_v57 }
 0x63f   :  { %v1469_v61 = vsub.f32 %v1458_v53, %v1467_v59 }
 0x640   :  { %v1472_v62 = vmul.f32 %v1470_v60, %v1470_v60 }
 0x641   :  { %v1471_v63 = vmul.f32 %v1469_v61, %v1469_v61 }
 0x642   :  { %v1476_v4 = vsel %vm93_vm0, %v1472_v62, 0.0 }
 0x643   :  { %1477 = vadd.xlane.f32.xlu1 %v1476_v4  ;;  %v1473_v10 = vsel %vm93_vm0, %v1471_v63, 0.0 }
 0x644   :  { %1474 = vadd.xlane.f32.xlu0 %v1473_v10 }
 0x654   :  { %2140 = vrot.lane.b32.xlu1 %v2139_v6, %s2293_s14 }
 0x658   :  { %1516 = vrot.lane.b32.xlu1 %v2410_v19, %s2293_s14 }
 0x65a   :  { %2135 = vrot.lane.b32.xlu0 %v2134_v3, %s2293_s14 }
 0x6d0   :  { %v1478_v5 = vpop.xlane.xlu1 %1477 }
 0x6d1   :  { %v1480_v19 = vmul.f32 0.03125, %v1478_v5  ;;  %v1475_v24 = vpop.xlane.xlu0 %1474 }
 0x6d2   :  { %v1479_v0 = vmul.f32 0.03125, %v1475_v24 }
 0x6d3   :  { %v1482_v1 = vadd.f32 1e-05, %v1480_v19 }
 0x6d4   :  { %v1481_v3 = vadd.f32 1e-05, %v1479_v0  ;;  %v2141_v25 = vpop.permute.xlu1 %2140 }
 0x6d5   :  { %2176 = vrsqrt.f32 %v1482_v1  ;;  %v2136_v26 = vpop.permute.xlu0 %2135  ;;  %v2143_v27 = vunpack.i.h.bf16 %v2141_v25  ;;  %v2142_v28 = vunpack.i.l.bf16 %v2141_v25 }
 0x6d6   :  { %2178 = vrsqrt.f32 %v1481_v3  ;;  %v2138_v48 = vunpack.i.h.bf16 %v2136_v26  ;;  %v2137_v30 = vunpack.i.l.bf16 %v2136_v26 }
 0x6d7   :  { %v2056_v17 = vpack.c.bf16 %v2143_v27, %v2142_v28 }
 0x6d8   :  { %v2052_v13 = vpack.c.bf16 %v2138_v48, %v2137_v30  ;;  %v1517_v11 = vpop.permute.xlu1 %1516 }
 0x6da   :  { %2053 = vmatprep.subr.bf16.mxu1 %v2052_v13 }
 0x6db   :  { %2055 = vmatpush3.bf16.msra.mxu1 %v2052_v13 }
 0x6dc   :  { %2057 = vmatprep.subr.bf16.mxu1 %v2056_v17 }
 0x6df   :  { %v2177_v32 = vpop.eup %2176  ;;  %2059 = vmatpush3.bf16.msra.mxu1 %v2056_v17 }
 0x6e0   :  { %v2179_v34 = vpop.eup %2178  ;;  %v1486_v35 = vmul.f32 %v2177_v32, %v1470_v60 }
 0x6e1   :  { %v1485_v36 = vmul.f32 %v2179_v34, %v1469_v61 }
 0x6e2   :  { %v1492_v38 = vmul.f32 %v1787_v33, %v1486_v35 }
 0x6e3   :  { %v1491_v47 = vmul.f32 %v1787_v33, %v1485_v36 }
 0x6e4   :  { %v1498_v39 = vadd.f32 %v1788_v37, %v1492_v38 }
 0x6e5   :  { %v1497_v8 = vadd.f32 %v1788_v37, %v1491_v47 }
 0x6e7   :  { %1974 = vmatprep.mubr.msk.f32.mxu1 %vm93_vm0, %v1497_v8 }
 0x6e8   :  { %1975 = vmatmul.mubr.msk.f32.vlgmr.msra.gmra.mrb[14].mxu1 %vm93_vm0, %v1498_v39 }
 0x7bb   :  { %v1976_v42 = vpop.f32.mrb[14].mxu1 }
 0x7bc   :  { %v1597_v31 = vadd.f32 %v1976_v42, %v1517_v11  ;;  %v1591_v16 = vpop.f32.mrb[15].mxu1 }
 0x7bd   :  { %v1592_v14 = vadd.f32 %v1591_v16, %v1517_v11 }
 0x7be   :  { %v1601_v44 = vmax.f32 %v1597_v31, 0.0 }
 0x7bf   :  { %v1600_v43 = vmax.f32 %v1592_v14, 0.0 }
 0x7c1   :  { %1993 = vmatprep.mubr.msk.f32.mxu0 %vm1606_vm6, %v1600_v43 }
 0x7c2   :  { %1994 = vmatmul.mubr.msk.f32.vlgmr.msra.gmra.mrb[8].mxu0 %vm1606_vm6, %v1601_v44 }
 0x895   :  { %v1995_v45 = vpop.f32.mrb[8].mxu0 }
 0x896   :  { %v1685_v46 = vadd.f32 %v1995_v45, %v1791_v15  ;;  %v1679_v49 = vpop.f32.mrb[9].mxu0 }
 0x897   :  { %v1680_v50 = vadd.f32 %v1791_v15, %v1679_v49 }
 0x898   :  { %v1689_v51 = vadd.f32 %v1685_v46, %v1498_v39 }
 0x899   :  { %v1688_v52 = vadd.f32 %v1680_v50, %v1497_v8 }
 0x89a   :  { %v1693_v53 = vsel %vm93_vm0, %v1689_v51, 0.0 }
 0x89b   :  { %1694 = vadd.xlane.f32.xlu1 %v1693_v53  ;;  %v1690_v54 = vsel %vm93_vm0, %v1688_v52, 0.0 }
 0x89c   :  { %1691 = vadd.xlane.f32.xlu0 %v1690_v54 }
 0x928   :  { %v1695_v55 = vpop.xlane.xlu1 %1694 }
 0x929   :  { %v1697_v56 = vmul.f32 0.03125, %v1695_v55  ;;  %v1692_v57 = vpop.xlane.xlu0 %1691 }
 0x92a   :  { %v1696_v58 = vmul.f32 0.03125, %v1692_v57 }
 0x92b   :  { %v1699_v59 = vsub.f32 %v1689_v51, %v1697_v56 }
 0x92c   :  { %v1698_v60 = vsub.f32 %v1688_v52, %v1696_v58 }
 0x92d   :  { %v1701_v63 = vmul.f32 %v1699_v59, %v1699_v59 }
 0x92e   :  { %v1700_v61 = vmul.f32 %v1698_v60, %v1698_v60 }
 0x92f   :  { %v1705_v4 = vsel %vm93_vm0, %v1701_v63, 0.0 }
 0x930   :  { %v1702_v62 = vsel %vm93_vm0, %v1700_v61, 0.0 }
 0x931   :  { %1703 = vadd.xlane.f32.xlu0 %v1702_v62 }
 0x935   :  { %1706 = vadd.xlane.f32.xlu0 %v1705_v4 }
 0x9be   :  { %v1704_v10 = vpop.xlane.xlu0 %1703 }
 0x9bf   :  { %v1708_v6 = vmul.f32 0.03125, %v1704_v10 }
 0x9c1   :  { %v1710_v7 = vadd.f32 1e-05, %v1708_v6 }
 0x9c2   :  { %v1707_v9 = vpop.xlane.xlu0 %1706 }
 0x9c3   :  { %2180 = vrsqrt.f32 %v1710_v7  ;;  %v1709_v12 = vmul.f32 0.03125, %v1707_v9 }
 0x9c5   :  { %v1711_v18 = vadd.f32 1e-05, %v1709_v12 }
 0x9c7   :  { %2182 = vrsqrt.f32 %v1711_v18 }
 0x9cd   :  { %v2181_v20 = vpop.eup %2180 }
 0x9ce   :  { %v1714_v22 = vmul.f32 %v2181_v20, %v1698_v60 }
 0x9d0   :  { %v1720_v2 = vmul.f32 %v1794_v21, %v1714_v22 }
 0x9d1   :  { %v2183_v5 = vpop.eup %2182 }
 0x9d2   :  { %v1715_v19 = vmul.f32 %v2183_v5, %v1699_v59  ;;  %v1726_v24 = vadd.f32 %v1795_v23, %v1720_v2 }
 0x9d4   :  { %v1721_v0 = vmul.f32 %v1794_v21, %v1715_v19  ;;  %1728 = vst.msk [vmem:[#allocation9] sm:$0xff] %vm93_vm0, %v1726_v24 }
 0x9d6   :  { %v1727_v1 = vadd.f32 %v1795_v23, %v1721_v0 }
 0x9d8   :  { %1729 = vst.msk [vmem:[#allocation9 + $0x8] sm:$0xff] %vm93_vm0, %v1727_v1 }
 0x9d9   :  { %2261 = shalt.err (!%p2258_p0)
}
 0x9da   :  { %s2262_s29 = scalar_lea.hbm %s2602_s4, 256 }
 0x9db   :  { %p2263_p1 = scmp.ne.s32.totalorder %s2602_s4, %s2262_s29  ;;  %p2266_p2 = scmp.lt.u32.totalorder %s2262_s29, %s2602_s4 }
 0x9dd   :  { %p2268_p3 = pnand %p2266_p2, %p2263_p1 }
 0x9df   :  { %2271 = shalt.err (!%p2268_p3)
}
 0x9e0   :  { %1741 = dma.vmem_to_hbm [thread:$0]  %s1736_s25, 256, %s2602_s4, [#allocation5], %s2280_s27, %s2280_s27, %s2281_s28  }
 0x9e1   :  { %2276 = dma.done.wait [#allocation5], 256  }
 0x9e2   :  { %2277 = vsyncadd [#allocation5], 4294967040 }
 0x9e3   :  { %1745 = vsyncpa [#allocation4], 1 }
 0x9e4   :  { %1746 = vsyncpa [#allocation7], 1 }
 0x9e5   :  { %1747 = vsyncpa [#allocation5], 1 }

</bundles_post_ra>
